<compile_context>
chip_gen: v7x
topology: tpu7x:2x2x1
jax: 0.10.0
libtpu: 0.0.40
codegen_flags: <defaults>
</compile_context>

<pallas_src>
import math

import jax
import jax.numpy as jnp
from jax.experimental import pallas as pl
from jax.experimental.pallas import tpu as pltpu


def _sdpa_kernel(x_ref, w_ref, b_ref, out_ref, score_ref, k_scr, v_scr):
    """Grid = (batch blocks, query tiles).

    x_ref     : (Bb, T, D)  compute dtype (bf16) - full sequence for this batch block
    w_ref     : (3, D, D)   pre-transposed [Wq.T, Wk.T, Wv.T] stacked on a leading axis
    b_ref     : (3, 1, D)   f32 biases
    out_ref   : (Bb, Tq, D)
    score_ref : (Bb, Tq, T)
    k_scr/v_scr : (Bb, T, D) compute-dtype VMEM scratch, filled once per batch block
    """
    qi = pl.program_id(1)
    bb, t, d = x_ref.shape
    tq = out_ref.shape[1]
    scale = 1.0 / math.sqrt(d)

    # ---- K/V projection: once per batch block, cached in VMEM scratch. ----
    @pl.when(qi == 0)
    def _():
        x2 = x_ref[...].reshape(bb * t, d)       # layout no-op when T % 8 == 0
        k = jnp.dot(x2, w_ref[1], preferred_element_type=jnp.float32) + b_ref[1]
        v = jnp.dot(x2, w_ref[2], preferred_element_type=jnp.float32) + b_ref[2]
        k_scr[...] = k.reshape(bb, t, d).astype(k_scr.dtype)
        v_scr[...] = v.reshape(bb, t, d).astype(v_scr.dtype)

    # ---- Q projection for this query tile only. ----
    if tq == t:
        xq = x_ref[...]
    else:
        q_start = pl.multiple_of(qi * tq, 8)     # Tq is a multiple of 8 here
        xq = x_ref[:, pl.ds(q_start, tq), :]
    q = jnp.dot(xq.reshape(bb * tq, d), w_ref[0],
                preferred_element_type=jnp.float32) + b_ref[0]
    # Fold 1/sqrt(D) into q; cast back to the compute dtype to feed the MXU.
    q = (q * scale).reshape(bb, tq, d).astype(k_scr.dtype)

    # score = q @ k^T, batched over Bb, contracting the feature axis
    # (no explicit .T in the kernel source).
    s = jnp.einsum('bqd,bkd->bqk', q, k_scr[...],
                   preferred_element_type=jnp.float32)

    # Numerically stable softmax over keys (dim=2 of (B, T, T)), all f32.
    m = jnp.max(s, axis=-1, keepdims=True)
    e = jnp.exp(s - m)
    denom = jnp.sum(e, axis=-1, keepdims=True)
    # Exact reciprocal: only (Bb,Tq,1) elements, and score rows should sum to 1.
    p = e * (1.0 / denom)

    out = jnp.einsum('bqk,bkd->bqd', p.astype(v_scr.dtype), v_scr[...],
                     preferred_element_type=jnp.float32)

    out_ref[...] = out.astype(out_ref.dtype)
    score_ref[...] = p.astype(score_ref.dtype)


def _vmem_capacity_bytes():
    try:
        info = pltpu.get_tpu_info()
        for attr in ("vmem_capacity_bytes", "vmem_capacity", "vmem_size_bytes"):
            v = getattr(info, attr, None)
            if v:
                return int(v)
    except Exception:
        pass
    return 64 * 1024 * 1024            # conservative default: v7x per-TC VMEM


def _vmem_estimate(bb, tq, t, d, in_b, out_b):
    """Rough per-step VMEM footprint: double-buffered blocks + scratch + f32
    intermediates. Used to size the batch block."""
    x_blk = 2 * bb * t * d * in_b                    # x block (double-buffered)
    w_blk = 2 * 3 * d * d * in_b + 2 * 3 * d * 4     # fused weights + biases
    kv_scr = 2 * bb * t * d * in_b                   # K/V scratch
    out_blk = 2 * bb * tq * d * out_b                # out block
    sc_blk = 2 * bb * tq * t * out_b                 # score block
    interim = (2 * bb * t * d + 2 * bb * tq * d + 3 * bb * tq * t) * 4
    return x_blk + w_blk + kv_scr + out_blk + sc_blk + interim


def _pick_blocks(B, T, D, in_b, out_b, vmem_budget):
    # Query tile: full T when small; otherwise the largest divisor of T that is
    # a multiple of 8 and <= 256 -> resident f32 intermediates are O(Tq*T),
    # not O(T^2), and the query axis supplies extra grid steps.
    if T <= 256 or T % 8 != 0:
        tq = T
    else:
        tq = 8
        for cand in range(8, min(T, 256) + 1, 8):
            if T % cand == 0:
                tq = cand
    # Batch block: largest divisor of B that fits the VMEM budget, capped at
    # B // 2 (when B >= 2) so the "parallel" batch axis always has >= 2 steps
    # (both v7x TensorCores used; pipelining everywhere).
    bb_cap = B if B == 1 else max(1, B // 2)
    bb = 1
    for cand in range(1, bb_cap + 1):
        if B % cand:
            continue
        if _vmem_estimate(cand, tq, T, D, in_b, out_b) <= vmem_budget:
            bb = cand
    return bb, tq


def scale_dot_product_attention(x, wq, bq, wk, bk, wv, bv,
                                *, compute_dtype=jnp.bfloat16):
    """out, score = softmax((xWq^T+bq)(xWk^T+bk)^T / sqrt(D)) @ (xWv^T+bv)."""
    B, T, D = x.shape
    out_dtype = x.dtype

    # One-time prep in the wrapper: stack pre-transposed weights on a LEADING
    # axis so the kernel splits q/k/v by a major-axis index (no lane slicing),
    # and cast MXU operands to bf16 (native MXU dtype, halves x/w DMA bytes).
    w_qkv = jnp.stack([wq.T, wk.T, wv.T], axis=0).astype(compute_dtype)  # (3, D, D)
    b_qkv = jnp.stack([bq, bk, bv], axis=0).reshape(3, 1, D).astype(jnp.float32)
    x_in = x.astype(compute_dtype)

    in_b = jnp.dtype(compute_dtype).itemsize
    out_b = jnp.dtype(out_dtype).itemsize

    vmem_cap = _vmem_capacity_bytes()
    vmem_limit = int(vmem_cap * 0.75)
    vmem_budget = int(vmem_limit * 0.60)
    Bb, Tq = _pick_blocks(B, T, D, in_b, out_b, vmem_budget)
    # Make sure the requested scoped limit covers the chosen blocks.
    vmem_limit = max(vmem_limit,
                     min(int(_vmem_estimate(Bb, Tq, T, D, in_b, out_b) * 1.25),
                         vmem_cap))
    grid = (B // Bb, T // Tq)

    out, score = pl.pallas_call(
        _sdpa_kernel,
        out_shape=(
            jax.ShapeDtypeStruct((B, T, D), out_dtype),
            jax.ShapeDtypeStruct((B, T, T), out_dtype),
        ),
        grid_spec=pltpu.PrefetchScalarGridSpec(
            num_scalar_prefetch=0,
            grid=grid,
            in_specs=[
                pl.BlockSpec((Bb, T, D), lambda b, q: (b, 0, 0)),
                pl.BlockSpec((3, D, D), lambda b, q: (0, 0, 0)),
                pl.BlockSpec((3, 1, D), lambda b, q: (0, 0, 0)),
            ],
            out_specs=[
                pl.BlockSpec((Bb, Tq, D), lambda b, q: (b, q, 0)),
                pl.BlockSpec((Bb, Tq, T), lambda b, q: (b, q, 0)),
            ],
            scratch_shapes=[
                pltpu.VMEM((Bb, T, D), compute_dtype),   # K cache per batch block
                pltpu.VMEM((Bb, T, D), compute_dtype),   # V cache per batch block
            ],
        ),
        compiler_params=pltpu.CompilerParams(
            # Batch axis shards across v7x's two TensorCores; query-tile axis is
            # sequential because the K/V scratch persists across it.
            dimension_semantics=("parallel", "arbitrary"),
            vmem_limit_bytes=vmem_limit,
        ),
    )(x_in, w_qkv, b_qkv)
    return out, score


def _reference(x, wq, bq, wk, bk, wv, bv):
    q = x @ wq.T + bq
    k = x @ wk.T + bk
    v = x @ wv.T + bv
    s = (q @ jnp.swapaxes(k, 1, 2)) / math.sqrt(x.shape[-1])
    s = jax.nn.softmax(s, axis=2)
    return s @ v, s


if __name__ == "__main__":
    B, T, D = 2, 8, 32
    key = jax.random.PRNGKey(0)
    kx, kq, kbq, kk, kbk, kv, kbv = jax.random.split(key, 7)

    x = jax.random.normal(kx, (B, T, D), dtype=jnp.float32)

    # Deterministic init matching nn.Linear's uniform(-1/sqrt(D), 1/sqrt(D)).
    bound = 1.0 / math.sqrt(D)
    wq = jax.random.uniform(kq, (D, D), jnp.float32, -bound, bound)
    bq = jax.random.uniform(kbq, (D,), jnp.float32, -bound, bound)
    wk = jax.random.uniform(kk, (D, D), jnp.float32, -bound, bound)
    bk = jax.random.uniform(kbk, (D,), jnp.float32, -bound, bound)
    wv = jax.random.uniform(kv, (D, D), jnp.float32, -bound, bound)
    bv = jax.random.uniform(kbv, (D,), jnp.float32, -bound, bound)

    out, score = scale_dot_product_attention(x, wq, bq, wk, bk, wv, bv)
    out = jax.block_until_ready(out)
    score = jax.block_until_ready(score)

    ref_out, ref_score = _reference(x, wq, bq, wk, bk, wv, bv)
    # Tolerance accounts for bf16 MXU operands (f32 accumulation / softmax).
    assert jnp.allclose(out, ref_out, atol=2e-2, rtol=2e-2), \
        float(jnp.max(jnp.abs(out - ref_out)))
    assert jnp.allclose(score, ref_score, atol=2e-2, rtol=2e-2), \
        float(jnp.max(jnp.abs(score - ref_score)))

    print("KERNEL_OK")
</pallas_src>

<mosaic_0001>
module attributes {stable_mosaic.version = 11 : i64} {
  func.func @_sdpa_kernel(%arg0: i32, %arg1: i32, %arg2: memref<1x8x32xbf16, #tpu.memory_space<vmem>>, %arg3: memref<3x32x32xbf16, #tpu.memory_space<vmem>>, %arg4: memref<3x1x32xf32, #tpu.memory_space<vmem>>, %arg5: memref<1x8x32xf32, #tpu.memory_space<vmem>>, %arg6: memref<1x8x8xf32, #tpu.memory_space<vmem>>, %arg7: memref<1x8x32xbf16, #tpu.memory_space<vmem>>, %arg8: memref<1x8x32xbf16, #tpu.memory_space<vmem>>) attributes {dimension_semantics = [#tpu.dimension_semantics<parallel>, #tpu.dimension_semantics<arbitrary>], iteration_bounds = array<i64: 2, 1>, scalar_prefetch = 0 : i64, scratch_operands = 2 : i64, tpu.core_type = #tpu.core_type<tc>, window_params = [{transform_indices = @transform_0, window_bounds = array<i64: 1, 8, 32>}, {pipeline_mode = #tpu.pipeline_mode<synchronous>, transform_indices = @transform_1, window_bounds = array<i64: 3, 32, 32>}, {pipeline_mode = #tpu.pipeline_mode<synchronous>, transform_indices = @transform_2, window_bounds = array<i64: 3, 1, 32>}, {transform_indices = @transform_3, window_bounds = array<i64: 1, 8, 32>}, {transform_indices = @transform_4, window_bounds = array<i64: 1, 8, 8>}]} {
    %c0_i32 = arith.constant 0 : i32
    %0 = arith.cmpi eq, %arg1, %c0_i32 : i32
    %1 = arith.extui %0 : i1 to i32
    %c0_i32_0 = arith.constant 0 : i32
    %2 = arith.cmpi ne, %1, %c0_i32_0 : i32
    scf.if %2 {
      %c0_27 = arith.constant 0 : index
      %c0_28 = arith.constant 0 : index
      %c0_29 = arith.constant 0 : index
      %34 = vector.load %arg2[%c0_27, %c0_28, %c0_29] : memref<1x8x32xbf16, #tpu.memory_space<vmem>>, vector<1x8x32xbf16>
      %35 = vector.shape_cast %34 : vector<1x8x32xbf16> to vector<8x32xbf16>
      %c1 = arith.constant 1 : index
      %c0_30 = arith.constant 0 : index
      %c0_31 = arith.constant 0 : index
      %36 = vector.load %arg3[%c1, %c0_30, %c0_31] : memref<3x32x32xbf16, #tpu.memory_space<vmem>>, vector<1x32x32xbf16>
      %37 = vector.shape_cast %36 : vector<1x32x32xbf16> to vector<32x32xbf16>
      %cst_32 = arith.constant dense<0.000000e+00> : vector<8x32xf32>
      %38 = tpu.matmul %35, %37, %cst_32 {dimension_numbers = #tpu.dot_dimension_numbers<[1], [0], [0], [1], [0, 0, 1, 1], [], []>} : vector<8x32xbf16>, vector<32x32xbf16>, vector<8x32xf32> -> vector<8x32xf32>
      %c1_33 = arith.constant 1 : index
      %c0_34 = arith.constant 0 : index
      %c0_35 = arith.constant 0 : index
      %39 = vector.load %arg4[%c1_33, %c0_34, %c0_35] : memref<3x1x32xf32, #tpu.memory_space<vmem>>, vector<1x1x32xf32>
      %40 = vector.shape_cast %39 : vector<1x1x32xf32> to vector<1x32xf32>
      %41 = vector.broadcast %40 : vector<1x32xf32> to vector<8x32xf32>
      %42 = arith.addf %38, %41 : vector<8x32xf32>
      %c2 = arith.constant 2 : index
      %c0_36 = arith.constant 0 : index
      %c0_37 = arith.constant 0 : index
      %43 = vector.load %arg3[%c2, %c0_36, %c0_37] : memref<3x32x32xbf16, #tpu.memory_space<vmem>>, vector<1x32x32xbf16>
      %44 = vector.shape_cast %43 : vector<1x32x32xbf16> to vector<32x32xbf16>
      %cst_38 = arith.constant dense<0.000000e+00> : vector<8x32xf32>
      %45 = tpu.matmul %35, %44, %cst_38 {dimension_numbers = #tpu.dot_dimension_numbers<[1], [0], [0], [1], [0, 0, 1, 1], [], []>} : vector<8x32xbf16>, vector<32x32xbf16>, vector<8x32xf32> -> vector<8x32xf32>
      %c2_39 = arith.constant 2 : index
      %c0_40 = arith.constant 0 : index
      %c0_41 = arith.constant 0 : index
      %46 = vector.load %arg4[%c2_39, %c0_40, %c0_41] : memref<3x1x32xf32, #tpu.memory_space<vmem>>, vector<1x1x32xf32>
      %47 = vector.shape_cast %46 : vector<1x1x32xf32> to vector<1x32xf32>
      %48 = vector.broadcast %47 : vector<1x32xf32> to vector<8x32xf32>
      %49 = arith.addf %45, %48 : vector<8x32xf32>
      %50 = vector.shape_cast %42 : vector<8x32xf32> to vector<1x8x32xf32>
      %51 = arith.truncf %50 : vector<1x8x32xf32> to vector<1x8x32xbf16>
      %c0_42 = arith.constant 0 : index
      %c0_43 = arith.constant 0 : index
      %c0_44 = arith.constant 0 : index
      %52 = vector.load %arg7[%c0_42, %c0_43, %c0_44] : memref<1x8x32xbf16, #tpu.memory_space<vmem>>, vector<1x8x32xbf16>
      tpu.vector_store %arg7[%c0_42, %c0_43, %c0_44], %51 {strides = array<i32>} : memref<1x8x32xbf16, #tpu.memory_space<vmem>>, vector<1x8x32xbf16>,
      %53 = vector.shape_cast %49 : vector<8x32xf32> to vector<1x8x32xf32>
      %54 = arith.truncf %53 : vector<1x8x32xf32> to vector<1x8x32xbf16>
      %c0_45 = arith.constant 0 : index
      %c0_46 = arith.constant 0 : index
      %c0_47 = arith.constant 0 : index
      %55 = vector.load %arg8[%c0_45, %c0_46, %c0_47] : memref<1x8x32xbf16, #tpu.memory_space<vmem>>, vector<1x8x32xbf16>
      tpu.vector_store %arg8[%c0_45, %c0_46, %c0_47], %54 {strides = array<i32>} : memref<1x8x32xbf16, #tpu.memory_space<vmem>>, vector<1x8x32xbf16>,
    } else {
    }
    %c0 = arith.constant 0 : index
    %c0_1 = arith.constant 0 : index
    %c0_2 = arith.constant 0 : index
    %3 = vector.load %arg2[%c0, %c0_1, %c0_2] : memref<1x8x32xbf16, #tpu.memory_space<vmem>>, vector<1x8x32xbf16>
    %4 = vector.shape_cast %3 : vector<1x8x32xbf16> to vector<8x32xbf16>
    %c0_3 = arith.constant 0 : index
    %c0_4 = arith.constant 0 : index
    %c0_5 = arith.constant 0 : index
    %5 = vector.load %arg3[%c0_3, %c0_4, %c0_5] : memref<3x32x32xbf16, #tpu.memory_space<vmem>>, vector<1x32x32xbf16>
    %6 = vector.shape_cast %5 : vector<1x32x32xbf16> to vector<32x32xbf16>
    %cst = arith.constant dense<0.000000e+00> : vector<8x32xf32>
    %7 = tpu.matmul %4, %6, %cst {dimension_numbers = #tpu.dot_dimension_numbers<[1], [0], [0], [1], [0, 0, 1, 1], [], []>} : vector<8x32xbf16>, vector<32x32xbf16>, vector<8x32xf32> -> vector<8x32xf32>
    %c0_6 = arith.constant 0 : index
    %c0_7 = arith.constant 0 : index
    %c0_8 = arith.constant 0 : index
    %8 = vector.load %arg4[%c0_6, %c0_7, %c0_8] : memref<3x1x32xf32, #tpu.memory_space<vmem>>, vector<1x1x32xf32>
    %9 = vector.shape_cast %8 : vector<1x1x32xf32> to vector<1x32xf32>
    %10 = vector.broadcast %9 : vector<1x32xf32> to vector<8x32xf32>
    %11 = arith.addf %7, %10 : vector<8x32xf32>
    %cst_9 = arith.constant 0.176776692 : f32
    %12 = vector.broadcast %cst_9 : f32 to vector<8x32xf32>
    %13 = arith.mulf %11, %12 : vector<8x32xf32>
    %14 = vector.shape_cast %13 : vector<8x32xf32> to vector<1x8x32xf32>
    %15 = arith.truncf %14 : vector<1x8x32xf32> to vector<1x8x32xbf16>
    %c0_10 = arith.constant 0 : index
    %c0_11 = arith.constant 0 : index
    %c0_12 = arith.constant 0 : index
    %16 = vector.load %arg7[%c0_10, %c0_11, %c0_12] : memref<1x8x32xbf16, #tpu.memory_space<vmem>>, vector<1x8x32xbf16>
    "tpu.trace_start"() <{level = 10 : i32, message = "bqd,bkd->bqk"}> : () -> ()
    %cst_13 = arith.constant dense<0.000000e+00> : vector<1x8x8xf32>
    %17 = tpu.matmul %15, %16, %cst_13 {dimension_numbers = #tpu.dot_dimension_numbers<[2], [2], [1], [1], [0, 0, 0, 1, 1, 1], [0], [0]>} : vector<1x8x32xbf16>, vector<1x8x32xbf16>, vector<1x8x8xf32> -> vector<1x8x8xf32>
    "tpu.trace_stop"() : () -> ()
    %cst_14 = arith.constant dense<0xFF800000> : vector<1x8xf32>
    %18 = vector.multi_reduction <maximumf>, %17, %cst_14 [2] : vector<1x8x8xf32> to vector<1x8xf32>
    %19 = vector.shape_cast %18 : vector<1x8xf32> to vector<1x8x1xf32>
    %20 = vector.broadcast %19 : vector<1x8x1xf32> to vector<1x8x8xf32>
    %21 = arith.subf %17, %20 : vector<1x8x8xf32>
    %22 = math.exp %21 : vector<1x8x8xf32>
    %cst_15 = arith.constant dense<0.000000e+00> : vector<1x8xf32>
    %23 = vector.multi_reduction <add>, %22, %cst_15 [2] : vector<1x8x8xf32> to vector<1x8xf32>
    %24 = vector.shape_cast %23 : vector<1x8xf32> to vector<1x8x1xf32>
    %cst_16 = arith.constant 1.000000e+00 : f32
    %25 = vector.broadcast %cst_16 : f32 to vector<1x8x1xf32>
    %26 = arith.divf %25, %24 : vector<1x8x1xf32>
    %27 = vector.broadcast %26 : vector<1x8x1xf32> to vector<1x8x8xf32>
    %28 = arith.mulf %22, %27 : vector<1x8x8xf32>
    %29 = arith.truncf %28 : vector<1x8x8xf32> to vector<1x8x8xbf16>
    %c0_17 = arith.constant 0 : index
    %c0_18 = arith.constant 0 : index
    %c0_19 = arith.constant 0 : index
    %30 = vector.load %arg8[%c0_17, %c0_18, %c0_19] : memref<1x8x32xbf16, #tpu.memory_space<vmem>>, vector<1x8x32xbf16>
    "tpu.trace_start"() <{level = 10 : i32, message = "bqk,bkd->bqd"}> : () -> ()
    %cst_20 = arith.constant dense<0.000000e+00> : vector<1x8x32xf32>
    %31 = tpu.matmul %29, %30, %cst_20 {dimension_numbers = #tpu.dot_dimension_numbers<[2], [1], [1], [2], [0, 0, 0, 1, 1, 2], [0], [0]>} : vector<1x8x8xbf16>, vector<1x8x32xbf16>, vector<1x8x32xf32> -> vector<1x8x32xf32>
    "tpu.trace_stop"() : () -> ()
    %c0_21 = arith.constant 0 : index
    %c0_22 = arith.constant 0 : index
    %c0_23 = arith.constant 0 : index
    %32 = vector.load %arg5[%c0_21, %c0_22, %c0_23] : memref<1x8x32xf32, #tpu.memory_space<vmem>>, vector<1x8x32xf32>
    tpu.vector_store %arg5[%c0_21, %c0_22, %c0_23], %31 {strides = array<i32>} : memref<1x8x32xf32, #tpu.memory_space<vmem>>, vector<1x8x32xf32>,
    %c0_24 = arith.constant 0 : index
    %c0_25 = arith.constant 0 : index
    %c0_26 = arith.constant 0 : index
    %33 = vector.load %arg6[%c0_24, %c0_25, %c0_26] : memref<1x8x8xf32, #tpu.memory_space<vmem>>, vector<1x8x8xf32>
    tpu.vector_store %arg6[%c0_24, %c0_25, %c0_26], %28 {strides = array<i32>} : memref<1x8x8xf32, #tpu.memory_space<vmem>>, vector<1x8x8xf32>,
    return
  }
  func.func @transform_0(%arg0: i32, %arg1: i32) -> (i32, i32, i32) {
    %c0_i32 = arith.constant 0 : i32
    %c0_i32_0 = arith.constant 0 : i32
    %c0_i32_1 = arith.constant 0 : i32
    return %arg0, %c0_i32, %c0_i32_0 : i32, i32, i32
  }
  func.func @transform_1(%arg0: i32, %arg1: i32) -> (i32, i32, i32) {
    %c0_i32 = arith.constant 0 : i32
    %c0_i32_0 = arith.constant 0 : i32
    %c0_i32_1 = arith.constant 0 : i32
    %c0_i32_2 = arith.constant 0 : i32
    return %c0_i32, %c0_i32_0, %c0_i32_1 : i32, i32, i32
  }
  func.func @transform_2(%arg0: i32, %arg1: i32) -> (i32, i32, i32) {
    %c0_i32 = arith.constant 0 : i32
    %c0_i32_0 = arith.constant 0 : i32
    %c0_i32_1 = arith.constant 0 : i32
    %c0_i32_2 = arith.constant 0 : i32
    return %c0_i32, %c0_i32_0, %c0_i32_1 : i32, i32, i32
  }
  func.func @transform_3(%arg0: i32, %arg1: i32) -> (i32, i32, i32) {
    %c0_i32 = arith.constant 0 : i32
    %c0_i32_0 = arith.constant 0 : i32
    return %arg0, %arg1, %c0_i32 : i32, i32, i32
  }
  func.func @transform_4(%arg0: i32, %arg1: i32) -> (i32, i32, i32) {
    %c0_i32 = arith.constant 0 : i32
    %c0_i32_0 = arith.constant 0 : i32
    return %arg0, %arg1, %c0_i32 : i32, i32, i32
  }
}

</mosaic_0001>

<bundles_post_ra>
// kernel: tpu_custom_call.1
= control target key start
LH: loop header
LB: loop body
LE: loop exit
PB: predicated region body
PF: predicated region fallthrough
CT: control target
= control target key end

     0   :  { %10 = vsyncpa [#allocation5], 0  ;;  %s1395_s0 = inlined_call_operand.hbm [shape: bf16[2,8,32], index: 0, kind: input, shape index: {}]   ;;  %s1396_s1 = inlined_call_operand.hbm [shape: bf16[3,32,32], index: 1, kind: input, shape index: {}]   ;;  %s1397_s2 = inlined_call_operand.vmem [shape: f32[3,1,32], index: 2, kind: input, shape index: {}]   ;;  %s1398_s3 = inlined_call_operand.hbm [shape: f32[2,8,32], index: 3, kind: output, shape index: {0}]   ;;  %s1399_s4 = inlined_call_operand.hbm [shape: f32[2,8,8], index: 4, kind: output, shape index: {1}]  }
   0x1   :  { %12 = vsyncpa [#allocation5 + $0x1], 0 }
   0x2   :  { %13 = vsyncpa [#allocation8], 0 }
   0x3   :  { %14 = vsyncpa [#allocation6], 0 }
   0x4   :  { %16 = vsyncpa [#allocation6 + $0x1], 0 }
   0x5   :  { %17 = vsyncpa [#allocation11], 0 }
   0x6   :  { %19 = vsyncpa [#allocation11 + $0x1], 0  ;;  %s1123_s15 = smov 0   ;;  %s1125_s16 = smov 0  }
   0x7   :  { %s1127_s17 = smov 0   ;;  %s1129_s18 = smov 0  }
   0x8   :  { %s1131_s19 = smov 0   ;;  %s1133_s20 = smov 0  }
   0x9 LB: > { %s737_s21 = sadd.s32 4294967295, %s1088_s20   ;;  %s738_s22 = sadd.s32 4294967294, %s1088_s20   ;;  %s1088_s20 = sphi %s1133_s20, %s25_s20   ;;  %s1084_s19 = sphi %s1131_s19, %s1423_s19   ;;  %s1080_s18 = sphi %s1129_s18, %s1422_s18   ;;  %s1076_s17 = sphi %s1127_s17, %s1421_s17   ;;  %s1072_s16 = sphi %s1125_s16, %s1420_s16   ;;  %s1068_s15 = sphi %s1123_s15, %s1419_s15  }
   0xa   : > { %p57_p0 = scmp.ne.s32.totalorder %s1072_s16, %s1068_s15  ;;  %p1157_p1 = scmp.eq.s32.totalorder %s737_s21, 0 }
   0xb   : > { %p1161_p2 = scmp.eq.s32.totalorder %s737_s21, 1  ;;  %p131_p3 = scmp.eq.s32.totalorder %s738_s22, 1 }
   0xc   : > { %s1404_s23 = scalar_select %p1157_p1, 1, 0 }
   0xd   : > { %s1405_s24 = scalar_select %p1161_p2, 1, 0 }
   0xe   : > { %p1167_p4 = por %p1157_p1, %p57_p0  ;;  %p739_p5 = scmp.ge.s32.totalorder %s1088_s20, 1 }
   0xf   : > { %p1172_p6 = por %p131_p3, %p57_p0  ;;  %p166_p7 = scmp.lt.s32.totalorder %s1088_s20, 3 }
  0x10   : > { %s1406_s25 = scalar_select %p1167_p4, 1, 0 }
  0x11   : > { %s1407_s26 = scalar_select %p1172_p6, 1, 0 }
  0x12   : > { %p1177_p8 = pnand %p739_p5, %p166_p7  ;;  %s1090_s28 = smov [#allocation7]  }
  0x13   : > { %s178_s29 = sshll.u32 %s1090_s28, 4  ;;  %s37_s5 = sadd.s32 1, %s1084_s19  ;;  %s179_s29 = int_to_ptr.vmem [resolvable:$true] %s178_s29 }
  0x14   : > { %s1408_s27 = scalar_select %p1177_p8, 1, 0 }
  0x15   : > { %p830_p9 = pneg %p1177_p8  ;;  %s912_s8 = scalar_lea.hbm %s1396_s1, 768 }
  0x16   : > { %p913_p12 = scmp.ne.s32.totalorder %s1396_s1, %s912_s8  ;;  %p919_p5 = scmp.lt.u32.totalorder %s912_s8, %s1396_s1 }
  0x17   : > { %p1186_p11 = pnand %p830_p9, %p1157_p1 }
  0x19   : > { %p914_p13 = pneg %p1186_p11 }
  0x1b   : > { %p915_p0 = pnand %p914_p13, %p913_p12 }
  0x1d   : > { %p916_p3 = pneg %p915_p0 }
  0x1f   : > { %p921_p7 = pnand %p919_p5, %p916_p3 }
  0x21   : > { %924 = shalt.err (!%p921_p7)
}
  0x22   : > { %s925_s13 = scalar_lea.vmem %s179_s29, 768  ;;  %p933_p1 = scmp.lt.s32.totalorder %s179_s29, %s179_s29 }
  0x23   : > { %p926_p9 = scmp.ne.s32.totalorder %s179_s29, %s925_s13  ;;  %p934_p4 = scmp.lt.s32.totalorder %s925_s13, %s925_s13 }
  0x25   : > { %p928_p10 = pnand %p926_p9, %p914_p13  ;;  %p935_p8 = por %p934_p4, %p933_p1 }
  0x27   : > { %p929_p6 = pneg %p928_p10 }
  0x29   : > { %p936_p2 = pnand %p935_p8, %p929_p6 }
  0x2b   : > { %939 = shalt.err (!%p936_p2)
}
  0x2c   : > { %s1091_s14 = smov 64   ;;  %s1092_s21 = smov 4  }
  0x2d   : > { %833 = dma.hbm_to_vmem [thread:$0]  (!%p1186_p11), %s1396_s1, 768, %s179_s29, [#allocation8], %s1091_s14, %s1091_s14, %s1092_s21  }
  0x2e   : > { %p39_p1 = scmp.ge.s32.totalorder %s37_s5, 2  ;;  %s44_s6 = sadd.s32 1, %s1076_s17 }
  0x2f   : > { %p51_p2 = scmp.ne.s32.totalorder %s1076_s17, %s1072_s16  ;;  %p52_p4 = scmp.eq.s32.totalorder %s1088_s20, 0 }
  0x30   : > { %s1425_s5 = smov (%p39_p1, %s37_s5), 0  ;;  %p1411_p8 = scmp.ne.s32.totalorder %s1405_s24, 0 }
  0x31   : > { %p1213_p6 = por %p52_p4, %p51_p2  ;;  %s41_s30 = ssub.s32 %s1084_s19, %s1425_s5 }
  0x32   : > { %p1219_p10 = por %p1411_p8, %p51_p2  ;;  %p846_p12 = scmp.lt.s32.totalorder %s1088_s20, 2 }
  0x33   : > { %p42_p11 = scmp.eq.s32.totalorder %s41_s30, 0  ;;  %s195_s29 = sand.u32 1, %s1076_s17  }
  0x34   : > { %s742_s9 = sshll.u32 %s195_s29, 2  ;;  %s743_s11 = sshll.u32 %s1084_s19, 6 }
  0x35   : > { %s1228_s10 = scalar_select %p42_p11, %s1076_s17, %s44_s6  }
  0x36   : > { %s1234_s14 = scalar_lea.hbm %s1395_s0, %s743_s11  ;;  %s199_s24 = scalar_lea.vmem [#allocation4], %s742_s9 }
  0x37   : > { %s206_s21 = sshll.u32 %s199_s24, 4  ;;  %p1240_p13 = pnand %p846_p12, %p1213_p6  ;;  %s1236_s21 = int_to_ptr.vmem [resolvable:$true] %s206_s21 }
  0x38   : > { %s196_s28 = scalar_lea.sflag [#allocation5], %s195_s29  ;;  %s940_s6 = scalar_lea.hbm %s1234_s14, 64 }
  0x39   : > { %p941_p0 = scmp.ne.s32.totalorder %s1234_s14, %s940_s6  ;;  %p942_p3 = pneg %p1240_p13 }
  0x3a   : > { %s945_s11 = scalar_lea.hbm %s1395_s0, 128  ;;  %p946_p9 = scmp.lt.u32.totalorder %s1234_s14, %s1395_s0 }
  0x3b   : > { %p943_p5 = pnand %p942_p3, %p941_p0  ;;  %p947_p1 = scmp.lt.u32.totalorder %s945_s11, %s940_s6 }
  0x3c   : > { %p949_p4 = scmp.lt.u32.totalorder %s940_s6, %s1234_s14 }
  0x3d   : > { %p944_p7 = pneg %p943_p5  ;;  %p948_p2 = por %p947_p1, %p946_p9 }
  0x3f   : > { %p950_p6 = por %p949_p4, %p948_p2 }
  0x41   : > { %p951_p8 = pnand %p950_p6, %p944_p7 }
  0x43   : > { %954 = shalt.err (!%p951_p8)
}
  0x44   : > { %s955_s29 = scalar_lea.vmem %s1236_s21, 64  ;;  %s1093_s13 = smov [#allocation4]  }
  0x45   : > { %p956_p12 = scmp.ne.s32.totalorder %s1236_s21, %s955_s29  ;;  %s960_s24 = sshll.u32 %s1093_s13, 4  ;;  %s961_s24 = int_to_ptr.vmem [resolvable:$false] %s960_s24 }
  0x46   : > { %s962_s30 = scalar_lea.vmem %s961_s24, 128  ;;  %p963_p5 = scmp.lt.s32.totalorder %s1236_s21, %s961_s24 }
  0x47   : > { %p958_p11 = pnand %p956_p12, %p942_p3  ;;  %p964_p9 = scmp.lt.s32.totalorder %s962_s30, %s955_s29 }
  0x49   : > { %p959_p0 = pneg %p958_p11  ;;  %p965_p1 = por %p964_p9, %p963_p5 }
  0x4b   : > { %p966_p2 = pnand %p965_p1, %p959_p0 }
  0x4d   : > { %969 = shalt.err (!%p966_p2)
}
  0x4e   : > { %837 = dma.hbm_to_vmem [thread:$0]  (!%p1240_p13), %s1234_s14, 64, %s1236_s21, %s196_s28  }
  0x4f   : > { %p1414_p7 = scmp.ne.s32.totalorder %s1408_s27, 0 }
  0x50   : > { %s1272_s6 = sand.u32 (!%p1414_p7), 1, %s1072_s16   ;;  %p1415_p3 = scmp.ne.s32.totalorder (!%p1414_p7), %s1406_s25, 0 }
  0x51   : > { %215 = sbr.rel (%p1414_p7) target bundleno = 1089 (0x441), region = 32  ;;  %s745_s9 = sshll.u32 (!%p1414_p7), %s1272_s6, 2 }
  0x52   : > { %s218_s11 = scalar_lea.sflag (!%p1414_p7), [#allocation5], %s1272_s6  ;;  %s221_s7 = scalar_lea.vmem (!%p1414_p7), [#allocation4], %s745_s9 }
  0x58   : > { %1051 = dma.done.wait (%p1415_p3), %s218_s11, 64  }
  0x59   : > { %1053 = vsyncadd (%p1415_p3), %s218_s11, 4294967232  ;;  %p1416_p4 = scmp.ne.s32.totalorder %s1404_s23, 0 }
  0x5b   : > { %1055 = dma.done.wait (%p1416_p4), [#allocation8], 768  }
  0x5c   : > { %1057 = vsyncadd (%p1416_p4), [#allocation8], 4294966528  ;;  %v1094_v0 = vmov 0.0   ;;  %vm1095_vm0 = vmmov 0   ;;  %v902_v1 = vld [vmem:[#allocation7 + $0x10] sm:$0xff]   ;;  %v903_v2 = vld [vmem:[#allocation7 + $0x18] sm:$0xff]  }
  0x5d   : > { %784 = vmatprep.subr.bf16.mxu0 %v1094_v0  ;;  %788 = vmatprep.mubr.msk.bf16.mxu0 %vm1095_vm0, %v1094_v0  ;;  %v260_v3 = vld [vmem:[%s221_s7] sm:$0xf]  ;;  %vm286_vm1 = vcmask 261120   ;;  %v904_v4 = vld [vmem:[#allocation7] sm:$0xff]   ;;  %v905_v5 = vld [vmem:[#allocation7 + $0x8] sm:$0xff]   ;;  %vm396_vm2 = vcmask 257024  }
  0x5e   : > { %792 = vmatprep.subr.bf16.mxu1 %v1094_v0  ;;  %796 = vmatprep.mubr.msk.bf16.mxu1 %vm1095_vm0, %v1094_v0  ;;  %v400_v6 = vld [vmem:[%s221_s7] sm:$0xf]  ;;  %v906_v7 = vld [vmem:[#allocation7 + $0x20] sm:$0xff]   ;;  %v907_v8 = vld [vmem:[#allocation7 + $0x28] sm:$0xff]   ;;  %vm535_vm3 = vcmask 1043456   ;;  %vm517_vm4 = vcmask 64512  }
  0x5f   : > { %785 = vmatpush3.bf16.msra.mxu0 %v902_v1  ;;  %793 = vmatpush3.bf16.msra.mxu1 %v906_v7  ;;  %v750_v9 = vld [vmem:[%s1397_s2 + $0x1] ss:$0 sm:$0xff]  ;;  %v759_v16 = vld [vmem:[%s1397_s2] ss:$0 sm:$0xff]  ;;  %v755_v26 = vld [vmem:[%s1397_s2 + $0x2] ss:$0 sm:$0xff] }
  0x60   : > { %786 = vmatprep.subr.bf16.mxu0 %v1094_v0  ;;  %794 = vmatprep.subr.bf16.mxu1 %v1094_v0  ;;  %s747_s28 = sshll.u32 %s1272_s6, 3  ;;  %s767_s29 = sshll.u32 %s1080_s18, 7 }
  0x61   : > { %s254_s12 = scalar_lea.vmem [#allocation10], %s747_s28  ;;  %s1318_s30 = scalar_lea.hbm %s1399_s4, %s767_s29 }
  0x62   : > { %s615_s9 = sshll.u32 %s254_s12, 4  ;;  %s587_s11 = scalar_lea.sflag [#allocation11], %s1272_s6  ;;  %s616_s9 = int_to_ptr.vmem [resolvable:$true] %s615_s9 }
  0x63   : > { %787 = vmatpush3.bf16.msra.mxu0 %v903_v2  ;;  %795 = vmatpush3.bf16.msra.mxu1 %v907_v8  ;;  %s970_s7 = scalar_lea.vmem %s616_s9, 128  ;;  %s1096_s23 = smov [#allocation10]  }
  0x64   : > { %800 = vmatprep.subr.bf16.mxu0 %v1094_v0  ;;  %808 = vmatprep.subr.bf16.mxu1 %v1094_v0  ;;  %p971_p13 = scmp.ne.s32.totalorder %s616_s9, %s970_s7  ;;  %s974_s25 = sshll.u32 %s1096_s23, 4  ;;  %s975_s25 = int_to_ptr.vmem [resolvable:$false] %s974_s25 }
  0x65   : > { %s976_s27 = scalar_lea.vmem %s975_s25, 256  ;;  %p977_p12 = scmp.lt.s32.totalorder %s616_s9, %s975_s25 }
  0x66   : > { %789 = vmatmul.mubr.msk.bf16.vlgmr.msra.gmra.mrb[0].mxu0 %vm286_vm1, %v260_v3  ;;  %797 = vmatmul.mubr.msk.bf16.vlgmr.msra.gmra.mrb[0].mxu1 %vm286_vm1, %v260_v3  ;;  %p972_p6 = pnand %p971_p13, %p1219_p10  ;;  %p978_p11 = scmp.lt.s32.totalorder %s976_s27, %s970_s7 }
  0x67   : > { %801 = vmatpush3.bf16.msra.mxu0 %v904_v4  ;;  %804 = vmatprep.mubr.msk.bf16.mxu0 %vm1095_vm0, %v1094_v0 }
  0x68   : > { %802 = vmatprep.subr.bf16.mxu0 %v1094_v0  ;;  %810 = vmatprep.mubr.msk.bf16.mxu1 %vm1095_vm0, %v1094_v0  ;;  %p973_p8 = pneg %p972_p6  ;;  %p979_p0 = por %p978_p11, %p977_p12 }
  0x6a   : > { %p980_p5 = pnand %p979_p0, %p973_p8 }
  0x6b   : > { %803 = vmatpush3.bf16.msra.mxu0 %v905_v5 }
  0x6c   : > { %814 = vmatprep.subr.bf16.mxu0 %v1094_v0 }
  0x6e   : > { %805 = vmatmul.mubr.msk.bf16.vlgmr.msra.gmra.mrb[4].mxu0 %vm286_vm1, %v400_v6 }
  0x6f   : > { %816 = vmatprep.mubr.msk.bf16.mxu0 %vm1095_vm0, %v1094_v0 }
 0x139   : > { %v324_v10 = vpop.f32.mrb[0].mxu0  ;;  %v389_v27 = vpop.f32.mrb[0].mxu1 }
 0x13a   : > { %v325_v11 = vadd.f32 %v750_v9, %v324_v10  ;;  %v790_v12 = vpop.f32.mrb[1].mxu0  ;;  %v390_v28 = vadd.f32 %v755_v26, %v389_v27  ;;  %v798_v29 = vpop.f32.mrb[1].mxu1 }
 0x13b   : > { %v327_v13 = vpop.f32.mrb[2].mxu0  ;;  %v392_v30 = vpop.f32.mrb[2].mxu1 }
 0x13c   : > { %v395_v14 = vpack.c.bf16 %v325_v11, %v325_v11  ;;  %v791_v15 = vpop.f32.mrb[3].mxu0  ;;  %v398_v31 = vpack.c.bf16 %v390_v28, %v390_v28  ;;  %v799_v32 = vpop.f32.mrb[3].mxu1 }
 0x13e   : > { %397 = vst.msk [vmem:[#allocation2] sm:$0xf] %vm396_vm2, %v395_v14  ;;  %399 = vst.msk [vmem:[#allocation3] sm:$0xf] %vm396_vm2, %v398_v31 }
 0x141   : > { %v462_v17 = vpop.f32.mrb[4].mxu0 }
 0x142   : > { %v463_v18 = vadd.f32 %v759_v16, %v462_v17  ;;  %v806_v19 = vpop.f32.mrb[5].mxu0 }
 0x143   : > { %v465_v20 = vpop.f32.mrb[6].mxu0 }
 0x144   : > { %v807_v21 = vpop.f32.mrb[7].mxu0  ;;  %v468_v23 = vmul.f32 0.17677669, %v463_v18 }
 0x145   : > { %v470_v22 = vld [vmem:[#allocation2] sm:$0xf]  ;;  %v531_v33 = vld [vmem:[#allocation3] sm:$0xf] }
 0x146   : > { %v475_v24 = vsel %vm286_vm1, %v470_v22, 0  ;;  %v469_v25 = vpack.c.bf16 %v468_v23, %v468_v23  ;;  %v537_v34 = vsel %vm535_vm3, %v531_v33, 0 }
 0x147   : > { %809 = vmatpush3.bf16.xpose.msra.mxu1 %v475_v24  ;;  %815 = vmatpush3.bf16.msra.mxu0 %v537_v34 }
 0x14e   : > { %811 = vmatmul.mubr.msk.bf16.vlgmr.msra.gmra.mrb[4].mxu1 %vm286_vm1, %v469_v25 }
 0x221   : > { %v511_v35 = vpop.f32.mrb[4].mxu1 }
 0x222   : > { %v812_v36 = vpop.f32.mrb[5].mxu1  ;;  %v518_v37 = vsel %vm517_vm4, %v511_v35, -inf }
 0x223   : > { %519 = vmax.xlane.f32.xlu0 %v518_v37  ;;  %v514_v38 = vpop.f32.mrb[6].mxu1 }
 0x224   : > { %v813_v39 = vpop.f32.mrb[7].mxu1 }
 0x2b0   : > { %v520_v40 = vpop.xlane.xlu0 %519 }
 0x2b1   : > { %v521_v41 = vsub.f32 %v511_v35, %v520_v40 }
 0x2b3   : > { %v522_v42 = vmul.f32 1.442695, %v521_v41 }
 0x2b5   : > { %908 = vpow2.f32 %v522_v42 }
 0x2bf   : > { %v909_v43 = vpop.eup %908 }
 0x2c0   : > { %v524_v44 = vsel %vm517_vm4, %v909_v43, 0.0 }
 0x2c1   : > { %525 = vadd.xlane.f32.xlu0 %v524_v44 }
 0x34e   : > { %v526_v45 = vpop.xlane.xlu0 %525 }
 0x34f   : > { %910 = vrcp.f32 %v526_v45 }
 0x359   : > { %v911_v46 = vpop.eup %910 }
 0x35a   : > { %v529_v47 = vmul.f32 %v911_v46, %v909_v43 }
 0x35c   : > { %v530_v48 = vpack.c.bf16 %v529_v47, %v529_v47  ;;  %580 = vst.msk [vmem:[%s254_s12] sm:$0xff] %vm517_vm4, %v529_v47 }
 0x35e   : > { %817 = vmatmul.mubr.msk.bf16.vlgmr.msra.gmra.mrb[8].mxu0 %vm517_vm4, %v530_v48 }
 0x35f   : > { %983 = shalt.err (!%p980_p5)
}
 0x360   : > { %s984_s14 = scalar_lea.hbm %s1318_s30, 128  ;;  %s988_s12 = scalar_lea.hbm %s1399_s4, 256 }
 0x361   : > { %p985_p9 = scmp.ne.s32.totalorder %s1318_s30, %s984_s14  ;;  %p989_p7 = scmp.lt.u32.totalorder %s1318_s30, %s1399_s4 }
 0x362   : > { %p990_p3 = scmp.lt.u32.totalorder %s988_s12, %s984_s14  ;;  %p992_p13 = scmp.lt.u32.totalorder %s984_s14, %s1318_s30 }
 0x363   : > { %p986_p1 = pnand %p985_p9, %p1219_p10 }
 0x364   : > { %p991_p4 = por %p990_p3, %p989_p7 }
 0x365   : > { %p987_p2 = pneg %p986_p1 }
 0x366   : > { %p993_p6 = por %p992_p13, %p991_p4 }
 0x368   : > { %p994_p8 = pnand %p993_p6, %p987_p2 }
 0x36a   : > { %997 = shalt.err (!%p994_p8)
}
 0x36b   : > { %827 = dma.vmem_to_hbm [thread:$0]  (%p1219_p10), %s616_s9, 128, %s1318_s30, %s587_s11  }
 0x36c   : > { %s247_s7 = scalar_lea.vmem [#allocation9], %s747_s28  ;;  %s1345_s21 = scalar_lea.hbm %s1398_s3, %s767_s29 }
 0x36d   : > { %s601_s23 = sshll.u32 %s247_s7, 4  ;;  %s582_s30 = scalar_lea.sflag [#allocation6], %s1272_s6  ;;  %s1347_s23 = int_to_ptr.vmem [resolvable:$true] %s601_s23 }
 0x36e   : > { %s998_s9 = scalar_lea.vmem %s1347_s23, 128  ;;  %s1097_s18 = smov [#allocation9]  }
 0x36f   : > { %p999_p12 = scmp.ne.s32.totalorder %s1347_s23, %s998_s9  ;;  %s1002_s28 = sshll.u32 %s1097_s18, 4  ;;  %s1003_s28 = int_to_ptr.vmem [resolvable:$false] %s1002_s28 }
 0x370   : > { %s1004_s29 = scalar_lea.vmem %s1003_s28, 256  ;;  %p1005_p5 = scmp.lt.s32.totalorder %s1347_s23, %s1003_s28 }
 0x371   : > { %p1000_p11 = pnand %p999_p12, %p1219_p10  ;;  %p1006_p9 = scmp.lt.s32.totalorder %s1004_s29, %s998_s9 }
 0x373   : > { %p1001_p0 = pneg %p1000_p11  ;;  %p1007_p1 = por %p1006_p9, %p1005_p5 }
 0x375   : > { %p1008_p2 = pnand %p1007_p1, %p1001_p0 }
 0x431   : > { %v573_v49 = vpop.f32.mrb[8].mxu0 }
 0x432   : > { %579 = vst.msk [vmem:[%s247_s7] sm:$0xff] %vm286_vm1, %v573_v49  ;;  %v818_v50 = vpop.f32.mrb[9].mxu0 }
 0x433   : > { %v576_v51 = vpop.f32.mrb[10].mxu0 }
 0x434   : > { %1011 = shalt.err (!%p1008_p2)
}
 0x435   : > { %s1012_s6 = scalar_lea.hbm %s1345_s21, 128  ;;  %s1016_s22 = scalar_lea.hbm %s1398_s3, 256 }
 0x436   : > { %p1013_p7 = scmp.ne.s32.totalorder %s1345_s21, %s1012_s6  ;;  %p1017_p13 = scmp.lt.u32.totalorder %s1345_s21, %s1398_s3 }
 0x437   : > { %p1018_p6 = scmp.lt.u32.totalorder %s1016_s22, %s1012_s6  ;;  %p1020_p12 = scmp.lt.u32.totalorder %s1012_s6, %s1345_s21 }
 0x438   : > { %p1014_p3 = pnand %p1013_p7, %p1219_p10 }
 0x439   : > { %p1019_p8 = por %p1018_p6, %p1017_p13 }
 0x43a   : > { %p1015_p4 = pneg %p1014_p3 }
 0x43b   : > { %p1021_p11 = por %p1020_p12, %p1019_p8 }
 0x43d   : > { %p1022_p0 = pnand %p1021_p11, %p1015_p4 }
 0x43f   : > { %1025 = shalt.err (!%p1022_p0)
}
 0x440   : > { %826 = dma.vmem_to_hbm [thread:$0]  (%p1219_p10), %s1347_s23, 128, %s1345_s21, %s582_s30   ;;  %v819_v52 = vpop.f32.mrb[11].mxu0 }
 0x441 PF: > { %s627_s24 = sand.u32 1, %s1068_s15   ;;  %p1417_p5 = scmp.ne.s32.totalorder %s1407_s26, 0 }
 0x442   : > { %p1418_p9 = scmp.ge.s32.totalorder %s1088_s20, 2  ;;  %s628_s7 = scalar_lea.sflag [#allocation6], %s627_s24 }
 0x444   : > { %p839_p1 = pnand %p1418_p9, %p1417_p5 }
 0x446   : > { %1059 = dma.done.wait (!%p839_p1), %s628_s7, 128  }
 0x447   : > { %1061 = vsyncadd (!%p839_p1), %s628_s7, 4294967168  ;;  %s637_s25 = scalar_lea.sflag [#allocation11], %s627_s24 }
 0x448   : > { %1063 = dma.done.wait (!%p839_p1), %s637_s25, 128  }
 0x449   : > { %1065 = vsyncadd (!%p839_p1), %s637_s25, 4294967168  ;;  %s25_s20 = sadd.s32 1, %s1088_s20   ;;  %s1419_s15 = smov %s1072_s16 }
 0x44a   : > { %p22_p2 = scmp.ge.s32.totalorder %s25_s20, 4   ;;  %s1420_s16 = smov %s1076_s17 }
 0x44b   : > { %s1421_s17 = smov %s1228_s10  ;;  %s1422_s18 = smov %s1084_s19 }
 0x44c   : > { %s1423_s19 = smov %s1425_s5  ;;  %24 = sbr.rel (!%p22_p2) target bundleno = 9 (0x9), region = 106 }
 0x453   :  { %642 = vsyncpa [#allocation5], 1 }
 0x454   :  { %644 = vsyncpa [#allocation5 + $0x1], 1 }
 0x455   :  { %645 = vsyncpa [#allocation8], 1 }
 0x456   :  { %646 = vsyncpa [#allocation6], 1 }
 0x457   :  { %648 = vsyncpa [#allocation6 + $0x1], 1 }
 0x458   :  { %649 = vsyncpa [#allocation11], 1 }
 0x459   :  { %651 = vsyncpa [#allocation11 + $0x1], 1 }

</bundles_post_ra>
